<compile_context>
chip_gen: v5e
topology: v5e:2x2
jax: 0.10.0
libtpu: 0.0.40
codegen_flags: <defaults>
</compile_context>

<pallas_src>
import math

import jax
import jax.numpy as jnp
from jax.experimental import pallas as pl
from jax.experimental.pallas import tpu as pltpu

FEAT_DIM = 2048        # models.resnet152().fc.in_features
HIDDEN = 64            # self.linear output dim
BN_EPS = 1e-5          # nn.BatchNorm1d default eps
DEFAULT_TB_CAP = 32    # batch-tile cap: keeps 224^2 tiles inside v7x's 64 MiB VMEM


# --------------------------------------------------------------------------
# VMEM sizing helpers
# --------------------------------------------------------------------------
def _vmem_capacity_bytes() -> int:
    try:
        info = pltpu.get_tpu_info()
        for name in ("vmem_capacity_bytes", "vmem_size_bytes", "vmem_bytes"):
            val = getattr(info, name, None)
            if val:
                return int(val)
    except Exception:
        pass
    return 64 * 1024 * 1024  # conservative fallback: v7x per-TensorCore VMEM


def _choose_hw_chunk(HW, TB, C, itemsize, img_buf_budget, max_hw_chunk):
    """Largest HW chunk that is a multiple of 128, divides HW and fits budget."""
    cap = max(128, img_buf_budget // max(1, TB * C * itemsize))
    if max_hw_chunk is not None:
        cap = min(cap, int(max_hw_chunk))
    if HW <= cap or HW % 128 != 0:
        # full-extent block is always layout-legal; chunking needs 128-multiples
        return HW
    thw = (cap // 128) * 128
    while thw >= 128 and HW % thw != 0:
        thw -= 128
    return thw if thw >= 128 else HW


# --------------------------------------------------------------------------
# Kernels
# --------------------------------------------------------------------------
def _make_fused_kernel(inv_hw, inv_b):
    """Whole batch resident: GAP over HW chunks -> folded matmuls -> BatchNorm."""

    def kernel(img_ref, weff_ref, w2_ref, gamma_ref, beta_ref, out_ref, pool_acc):
        k = pl.program_id(0)

        @pl.when(k == 0)
        def _init():
            pool_acc[...] = jnp.zeros_like(pool_acc)

        # partial spatial sum of this HW chunk (bf16 stream, f32 accumulate)
        pool_acc[...] += jnp.sum(img_ref[...].astype(jnp.float32), axis=2)

        @pl.when(k == pl.num_programs(0) - 1)
        def _finalize():
            pooled = pool_acc[...] * inv_hw                       # GAP
            h = jnp.dot(pooled, weff_ref[...],
                        preferred_element_type=jnp.float32)       # (B, 64)
            z = jnp.dot(h, w2_ref[...],
                        preferred_element_type=jnp.float32)       # (B, ncls_pad)
            # training-mode BatchNorm1d over the batch (biased variance).
            # b1/b2 omitted upstream: the batch-mean subtraction cancels any
            # per-class constant added before BN, so the output is identical.
            mu = jnp.sum(z, axis=0, keepdims=True) * inv_b
            zc = z - mu
            var = jnp.sum(zc * zc, axis=0, keepdims=True) * inv_b
            scale = gamma_ref[...] * jax.lax.rsqrt(var + BN_EPS)  # gamma folded in
            out_ref[...] = zc * scale + beta_ref[...]

    return kernel


def _make_head_kernel(inv_hw):
    """Batch-tiled head (no BN): GAP over HW chunks -> folded matmuls -> logits."""

    def kernel(img_ref, weff_ref, w2_ref, z_ref, pool_acc):
        k = pl.program_id(1)

        @pl.when(k == 0)
        def _init():
            pool_acc[...] = jnp.zeros_like(pool_acc)

        pool_acc[...] += jnp.sum(img_ref[...].astype(jnp.float32), axis=2)

        @pl.when(k == pl.num_programs(1) - 1)
        def _finalize():
            pooled = pool_acc[...] * inv_hw
            h = jnp.dot(pooled, weff_ref[...], preferred_element_type=jnp.float32)
            z_ref[...] = jnp.dot(h, w2_ref[...], preferred_element_type=jnp.float32)

    return kernel


# --------------------------------------------------------------------------
# Hoisted, call-independent parameter folding  [review #10]
# --------------------------------------------------------------------------
def fold_params(params):
    """Fold the frozen projection into the first Linear and lane-pad the head."""
    num_cls = params["w2"].shape[1]
    ncls_pad = ((num_cls + 127) // 128) * 128                     # lane-dense width
    w_eff = params["wproj"] @ params["w1"]                        # (C, 64)
    w2_p = jnp.zeros((HIDDEN, ncls_pad), jnp.float32).at[:, :num_cls].set(params["w2"])
    gamma_p = jnp.ones((1, ncls_pad), jnp.float32).at[:, :num_cls].set(params["gamma"])
    beta_p = jnp.zeros((1, ncls_pad), jnp.float32).at[:, :num_cls].set(params["beta"])
    # b1/b2 intentionally dropped: train-mode BN cancels pre-BN constants.
    return {"w_eff": w_eff, "w2_p": w2_p, "gamma_p": gamma_p, "beta_p": beta_p,
            "num_cls": num_cls, "ncls_pad": ncls_pad}


# --------------------------------------------------------------------------
# Forward wrapper
# --------------------------------------------------------------------------
def net_forward(image, folded, *, max_batch_tile=None, max_hw_chunk=None,
                image_dtype=jnp.bfloat16):
    """image: (B, C, H, W) NCHW.  `folded` from fold_params()."""
    B, C, H, W = image.shape
    HW = H * W
    num_cls, ncls_pad = folded["num_cls"], folded["ncls_pad"]

    # bf16 stream halves the dominant HBM read; all accumulation stays f32.
    img3 = image.astype(image_dtype).reshape(B, C, HW)
    itemsize = img3.dtype.itemsize

    vmem_limit = min(int(0.75 * _vmem_capacity_bytes()), 100 * 1024 * 1024)
    vmem_limit = max(vmem_limit, 32 * 1024 * 1024)
    img_buf_budget = vmem_limit // 4          # 2 in-flight image buffers + headroom

    # ---- tile selection -------------------------------------------------
    tb_cap = int(max_batch_tile) if max_batch_tile is not None else DEFAULT_TB_CAP
    if B > tb_cap and B % 8 == 0:
        # Split path: keep the batch axis "parallel" (v7x two-TC sharding).
        fuse_bn = False
        tb_cap = max(8, tb_cap)
        TB = max(d for d in range(8, tb_cap + 1, 8) if B % d == 0)
    else:
        # Fused path: whole batch resident; BN finalized inside the kernel.
        fuse_bn = True
        TB = B

    THW = _choose_hw_chunk(HW, TB, C, itemsize, img_buf_budget, max_hw_chunk)
    nk = HW // THW
    nb = B // TB
    inv_hw = 1.0 / float(HW)

    if fuse_bn:
        out_pad = pl.pallas_call(
            _make_fused_kernel(inv_hw, 1.0 / float(B)),
            out_shape=jax.ShapeDtypeStruct((B, ncls_pad), jnp.float32),
            grid=(nk,),
            in_specs=[
                pl.BlockSpec((B, C, THW), lambda k: (0, 0, k)),        # image chunk
                pl.BlockSpec((C, HIDDEN), lambda k: (0, 0)),           # folded weight
                pl.BlockSpec((HIDDEN, ncls_pad), lambda k: (0, 0)),    # fc1 (padded)
                pl.BlockSpec((1, ncls_pad), lambda k: (0, 0)),         # gamma
                pl.BlockSpec((1, ncls_pad), lambda k: (0, 0)),         # beta
            ],
            out_specs=pl.BlockSpec((B, ncls_pad), lambda k: (0, 0)),   # resident out
            scratch_shapes=[pltpu.VMEM((B, C), jnp.float32)],          # GAP accumulator
            compiler_params=pltpu.CompilerParams(
                dimension_semantics=("arbitrary",),                    # reduction axis
                vmem_limit_bytes=vmem_limit),
        )(img3, folded["w_eff"], folded["w2_p"], folded["gamma_p"], folded["beta_p"])
        return out_pad[:, :num_cls]

    # ---- split path: parallel batch tiles, BN on the tiny logits in-wrapper ----
    z_pad = pl.pallas_call(
        _make_head_kernel(inv_hw),
        out_shape=jax.ShapeDtypeStruct((B, ncls_pad), jnp.float32),
        grid=(nb, nk),
        in_specs=[
            pl.BlockSpec((TB, C, THW), lambda b, k: (b, 0, k)),
            pl.BlockSpec((C, HIDDEN), lambda b, k: (0, 0)),
            pl.BlockSpec((HIDDEN, ncls_pad), lambda b, k: (0, 0)),
        ],
        out_specs=pl.BlockSpec((TB, ncls_pad), lambda b, k: (b, 0)),
        scratch_shapes=[pltpu.VMEM((TB, C), jnp.float32)],
        compiler_params=pltpu.CompilerParams(
            dimension_semantics=("parallel", "arbitrary"),
            vmem_limit_bytes=vmem_limit),
    )(img3, folded["w_eff"], folded["w2_p"])

    # (B, 128) BatchNorm: pure launch overhead as a kernel, so do it in jnp.
    mu = jnp.mean(z_pad, axis=0, keepdims=True)
    var = jnp.mean((z_pad - mu) ** 2, axis=0, keepdims=True)
    out_pad = (z_pad - mu) * (folded["gamma_p"] * jax.lax.rsqrt(var + BN_EPS)) \
        + folded["beta_p"]
    return out_pad[:, :num_cls]


# --------------------------------------------------------------------------
# Parameter init (PyTorch Linear-style uniform bounds) + pure-JAX reference
# --------------------------------------------------------------------------
def init_params(key, in_channels, num_cls):
    kproj, k1a, k1b, k2a, k2b = jax.random.split(key, 5)

    def linear_init(kw, kb, fan_in, fan_out):
        bound = 1.0 / math.sqrt(fan_in)
        w = jax.random.uniform(kw, (fan_in, fan_out), jnp.float32, -bound, bound)
        b = jax.random.uniform(kb, (1, fan_out), jnp.float32, -bound, bound)
        return w, b

    # Stand-in frozen feature extractor projection (fixed, deterministic).
    wproj = jax.random.normal(kproj, (in_channels, FEAT_DIM), jnp.float32)
    wproj = wproj / math.sqrt(in_channels)
    w1, b1 = linear_init(k1a, k1b, FEAT_DIM, HIDDEN)
    w2, b2 = linear_init(k2a, k2b, HIDDEN, num_cls)
    return {"wproj": wproj, "w1": w1, "b1": b1, "w2": w2, "b2": b2,
            "gamma": jnp.ones((1, num_cls), jnp.float32),
            "beta": jnp.zeros((1, num_cls), jnp.float32)}


def reference_forward(image, params):
    """Plain-JAX reference of the module forward (with biases, unfolded)."""
    x = image.astype(jnp.float32)
    B, C, H, W = x.shape
    pooled = jnp.mean(x.reshape(B, C, H * W), axis=2)          # stand-in trunk: GAP
    feats = pooled @ params["wproj"]                           # frozen projection
    h = feats @ params["w1"] + params["b1"]                    # Linear(2048, 64)
    z = h @ params["w2"] + params["b2"]                        # Linear(64, num_cls)
    mu = jnp.mean(z, axis=0, keepdims=True)                    # train-mode BN
    var = jnp.mean((z - mu) ** 2, axis=0, keepdims=True)
    return (z - mu) * params["gamma"] * jax.lax.rsqrt(var + BN_EPS) + params["beta"]


# --------------------------------------------------------------------------
if __name__ == "__main__":
    jax.config.update("jax_default_matmul_precision", "highest")  # accurate reference
    key = jax.random.PRNGKey(0)
    k_img, k_par, k_img2, k_par2 = jax.random.split(key, 4)

    # ---- primary demo: fused single-kernel path, single HW chunk ----
    B, C, H, W = 2, 4, 16, 16
    NUM_CLS = 43
    image = jax.random.normal(k_img, (B, C, H, W), jnp.float32)
    params = init_params(k_par, C, NUM_CLS)
    folded = fold_params(params)            # hoisted: folded once, reused per call

    out = jax.block_until_ready(net_forward(image, folded))
    assert out.shape == (B, NUM_CLS) and out.dtype == jnp.float32
    assert bool(jnp.all(jnp.isfinite(out)))
    ref = reference_forward(image.astype(jnp.bfloat16), params)   # same bf16 input
    err = float(jnp.max(jnp.abs(out - ref)))
    assert err < 5e-2, f"fused path mismatch: max|diff|={err}"

    # ---- exercise the chunked HW-reduction path on the same inputs ----
    out_chunked = jax.block_until_ready(net_forward(image, folded, max_hw_chunk=128))
    err_c = float(jnp.max(jnp.abs(out_chunked - ref)))
    assert err_c < 5e-2, f"chunked path mismatch: max|diff|={err_c}"

    # ---- exercise the split path (parallel batch tiles + wrapper BN) ----
    B2, C2, H2, W2, NUM_CLS2 = 16, 3, 8, 8, 10
    image2 = jax.random.normal(k_img2, (B2, C2, H2, W2), jnp.float32)
    params2 = init_params(k_par2, C2, NUM_CLS2)
    folded2 = fold_params(params2)
    out2 = jax.block_until_ready(net_forward(image2, folded2, max_batch_tile=8))
    assert out2.shape == (B2, NUM_CLS2)
    ref2 = reference_forward(image2.astype(jnp.bfloat16), params2)
    err2 = float(jnp.max(jnp.abs(out2 - ref2)))
    assert err2 < 5e-2, f"split path mismatch: max|diff|={err2}"

    print("KERNEL_OK")
</pallas_src>

<mosaic_0001>
module attributes {stable_mosaic.version = 11 : i64} {
  func.func @kernel(%arg0: i32, %arg1: memref<2x4x256xbf16, #tpu.memory_space<vmem>>, %arg2: memref<4x64xf32, #tpu.memory_space<vmem>>, %arg3: memref<64x128xf32, #tpu.memory_space<vmem>>, %arg4: memref<1x128xf32, #tpu.memory_space<vmem>>, %arg5: memref<1x128xf32, #tpu.memory_space<vmem>>, %arg6: memref<2x128xf32, #tpu.memory_space<vmem>>, %arg7: memref<2x4xf32, #tpu.memory_space<vmem>>) attributes {dimension_semantics = [#tpu.dimension_semantics<arbitrary>], iteration_bounds = array<i64: 1>, scalar_prefetch = 0 : i64, scratch_operands = 1 : i64, tpu.core_type = #tpu.core_type<tc>, window_params = [{transform_indices = @transform_0, window_bounds = array<i64: 2, 4, 256>}, {pipeline_mode = #tpu.pipeline_mode<synchronous>, transform_indices = @transform_1, window_bounds = array<i64: 4, 64>}, {pipeline_mode = #tpu.pipeline_mode<synchronous>, transform_indices = @transform_2, window_bounds = array<i64: 64, 128>}, {pipeline_mode = #tpu.pipeline_mode<synchronous>, transform_indices = @transform_3, window_bounds = array<i64: 1, 128>}, {pipeline_mode = #tpu.pipeline_mode<synchronous>, transform_indices = @transform_4, window_bounds = array<i64: 1, 128>}, {pipeline_mode = #tpu.pipeline_mode<synchronous>, transform_indices = @transform_5, window_bounds = array<i64: 2, 128>}]} {
    %c0_i32 = arith.constant 0 : i32
    %0 = arith.cmpi eq, %arg0, %c0_i32 : i32
    %1 = arith.extui %0 : i1 to i32
    %c0_i32_0 = arith.constant 0 : i32
    %2 = arith.cmpi ne, %1, %c0_i32_0 : i32
    scf.if %2 {
      %cst_9 = arith.constant 0.000000e+00 : f32
      %12 = vector.broadcast %cst_9 : f32 to vector<2x4xf32>
      %c0_10 = arith.constant 0 : index
      %c0_11 = arith.constant 0 : index
      %13 = vector.load %arg7[%c0_10, %c0_11] : memref<2x4xf32, #tpu.memory_space<vmem>>, vector<2x4xf32>
      tpu.vector_store %arg7[%c0_10, %c0_11], %12 {strides = array<i32>} : memref<2x4xf32, #tpu.memory_space<vmem>>, vector<2x4xf32>,
    } else {
    }
    %c0 = arith.constant 0 : index
    %c0_1 = arith.constant 0 : index
    %3 = vector.load %arg7[%c0, %c0_1] : memref<2x4xf32, #tpu.memory_space<vmem>>, vector<2x4xf32>
    %c0_2 = arith.constant 0 : index
    %c0_3 = arith.constant 0 : index
    %c0_4 = arith.constant 0 : index
    %4 = vector.load %arg1[%c0_2, %c0_3, %c0_4] : memref<2x4x256xbf16, #tpu.memory_space<vmem>>, vector<2x4x256xbf16>
    %5 = arith.extf %4 : vector<2x4x256xbf16> to vector<2x4x256xf32>
    %cst = arith.constant dense<0.000000e+00> : vector<2x4xf32>
    %6 = vector.multi_reduction <add>, %5, %cst [2] : vector<2x4x256xf32> to vector<2x4xf32>
    %7 = arith.addf %3, %6 : vector<2x4xf32>
    %c0_5 = arith.constant 0 : index
    %c0_6 = arith.constant 0 : index
    %8 = vector.load %arg7[%c0_5, %c0_6] : memref<2x4xf32, #tpu.memory_space<vmem>>, vector<2x4xf32>
    tpu.vector_store %arg7[%c0_5, %c0_6], %7 {strides = array<i32>} : memref<2x4xf32, #tpu.memory_space<vmem>>, vector<2x4xf32>,
    %c0_i32_7 = arith.constant 0 : i32
    %9 = arith.cmpi eq, %arg0, %c0_i32_7 : i32
    %10 = arith.extui %9 : i1 to i32
    %c0_i32_8 = arith.constant 0 : i32
    %11 = arith.cmpi ne, %10, %c0_i32_8 : i32
    scf.if %11 {
      %c0_9 = arith.constant 0 : index
      %c0_10 = arith.constant 0 : index
      %12 = vector.load %arg7[%c0_9, %c0_10] : memref<2x4xf32, #tpu.memory_space<vmem>>, vector<2x4xf32>
      %cst_11 = arith.constant 3.906250e-03 : f32
      %13 = vector.broadcast %cst_11 : f32 to vector<2x4xf32>
      %14 = arith.mulf %12, %13 : vector<2x4xf32>
      %c0_12 = arith.constant 0 : index
      %c0_13 = arith.constant 0 : index
      %15 = vector.load %arg2[%c0_12, %c0_13] : memref<4x64xf32, #tpu.memory_space<vmem>>, vector<4x64xf32>
      %cst_14 = arith.constant dense<0.000000e+00> : vector<2x64xf32>
      %16 = tpu.matmul %14, %15, %cst_14 {dimension_numbers = #tpu.dot_dimension_numbers<[1], [0], [0], [1], [0, 0, 1, 1], [], []>, precision = #tpu.contract_precision<fp32>} : vector<2x4xf32>, vector<4x64xf32>, vector<2x64xf32> -> vector<2x64xf32>
      %c0_15 = arith.constant 0 : index
      %c0_16 = arith.constant 0 : index
      %17 = vector.load %arg3[%c0_15, %c0_16] : memref<64x128xf32, #tpu.memory_space<vmem>>, vector<64x128xf32>
      %cst_17 = arith.constant dense<0.000000e+00> : vector<2x128xf32>
      %18 = tpu.matmul %16, %17, %cst_17 {dimension_numbers = #tpu.dot_dimension_numbers<[1], [0], [0], [1], [0, 0, 1, 1], [], []>, precision = #tpu.contract_precision<fp32>} : vector<2x64xf32>, vector<64x128xf32>, vector<2x128xf32> -> vector<2x128xf32>
      %cst_18 = arith.constant dense<0.000000e+00> : vector<128xf32>
      %19 = vector.multi_reduction <add>, %18, %cst_18 [0] : vector<2x128xf32> to vector<128xf32>
      %20 = vector.shape_cast %19 : vector<128xf32> to vector<1x128xf32>
      %cst_19 = arith.constant 5.000000e-01 : f32
      %21 = vector.broadcast %cst_19 : f32 to vector<1x128xf32>
      %22 = arith.mulf %20, %21 : vector<1x128xf32>
      %23 = vector.broadcast %22 : vector<1x128xf32> to vector<2x128xf32>
      %24 = arith.subf %18, %23 : vector<2x128xf32>
      %25 = arith.mulf %24, %24 : vector<2x128xf32>
      %cst_20 = arith.constant dense<0.000000e+00> : vector<128xf32>
      %26 = vector.multi_reduction <add>, %25, %cst_20 [0] : vector<2x128xf32> to vector<128xf32>
      %27 = vector.shape_cast %26 : vector<128xf32> to vector<1x128xf32>
      %cst_21 = arith.constant 5.000000e-01 : f32
      %28 = vector.broadcast %cst_21 : f32 to vector<1x128xf32>
      %29 = arith.mulf %27, %28 : vector<1x128xf32>
      %c0_22 = arith.constant 0 : index
      %c0_23 = arith.constant 0 : index
      %30 = vector.load %arg4[%c0_22, %c0_23] : memref<1x128xf32, #tpu.memory_space<vmem>>, vector<1x128xf32>
      %cst_24 = arith.constant 9.99999974E-6 : f32
      %31 = vector.broadcast %cst_24 : f32 to vector<1x128xf32>
      %32 = arith.addf %29, %31 : vector<1x128xf32>
      %33 = math.rsqrt %32 : vector<1x128xf32>
      %34 = arith.mulf %30, %33 : vector<1x128xf32>
      %35 = vector.broadcast %34 : vector<1x128xf32> to vector<2x128xf32>
      %36 = arith.mulf %24, %35 : vector<2x128xf32>
      %c0_25 = arith.constant 0 : index
      %c0_26 = arith.constant 0 : index
      %37 = vector.load %arg5[%c0_25, %c0_26] : memref<1x128xf32, #tpu.memory_space<vmem>>, vector<1x128xf32>
      %38 = vector.broadcast %37 : vector<1x128xf32> to vector<2x128xf32>
      %39 = arith.addf %36, %38 : vector<2x128xf32>
      %c0_27 = arith.constant 0 : index
      %c0_28 = arith.constant 0 : index
      %40 = vector.load %arg6[%c0_27, %c0_28] : memref<2x128xf32, #tpu.memory_space<vmem>>, vector<2x128xf32>
      tpu.vector_store %arg6[%c0_27, %c0_28], %39 {strides = array<i32>} : memref<2x128xf32, #tpu.memory_space<vmem>>, vector<2x128xf32>,
    } else {
    }
    return
  }
  func.func @transform_0(%arg0: i32) -> (i32, i32, i32) {
    %c0_i32 = arith.constant 0 : i32
    %c0_i32_0 = arith.constant 0 : i32
    %c0_i32_1 = arith.constant 0 : i32
    return %c0_i32, %c0_i32_0, %arg0 : i32, i32, i32
  }
  func.func @transform_1(%arg0: i32) -> (i32, i32) {
    %c0_i32 = arith.constant 0 : i32
    %c0_i32_0 = arith.constant 0 : i32
    %c0_i32_1 = arith.constant 0 : i32
    return %c0_i32, %c0_i32_0 : i32, i32
  }
  func.func @transform_2(%arg0: i32) -> (i32, i32) {
    %c0_i32 = arith.constant 0 : i32
    %c0_i32_0 = arith.constant 0 : i32
    %c0_i32_1 = arith.constant 0 : i32
    return %c0_i32, %c0_i32_0 : i32, i32
  }
  func.func @transform_3(%arg0: i32) -> (i32, i32) {
    %c0_i32 = arith.constant 0 : i32
    %c0_i32_0 = arith.constant 0 : i32
    %c0_i32_1 = arith.constant 0 : i32
    return %c0_i32, %c0_i32_0 : i32, i32
  }
  func.func @transform_4(%arg0: i32) -> (i32, i32) {
    %c0_i32 = arith.constant 0 : i32
    %c0_i32_0 = arith.constant 0 : i32
    %c0_i32_1 = arith.constant 0 : i32
    return %c0_i32, %c0_i32_0 : i32, i32
  }
  func.func @transform_5(%arg0: i32) -> (i32, i32) {
    %c0_i32 = arith.constant 0 : i32
    %c0_i32_0 = arith.constant 0 : i32
    %c0_i32_1 = arith.constant 0 : i32
    return %c0_i32, %c0_i32_0 : i32, i32
  }
}

</mosaic_0001>

<bundles_post_ra>
// kernel: tpu_custom_call.1
= control target key start
LH: loop header
LB: loop body
LE: loop exit
PB: predicated region body
PF: predicated region fallthrough
CT: control target
= control target key end

     0   :  { %10 = vsyncpa [#allocation4], 0  ;;  %s812_s0 = inlined_call_operand.hbm [shape: bf16[2,4,256], index: 0, kind: input, shape index: {}]   ;;  %s813_s1 = inlined_call_operand.hbm [shape: f32[4,64], index: 1, kind: input, shape index: {}]   ;;  %s814_s2 = inlined_call_operand.hbm [shape: f32[64,128], index: 2, kind: input, shape index: {}]   ;;  %s815_s3 = inlined_call_operand.vmem [shape: f32[1,128], index: 3, kind: input, shape index: {}]   ;;  %s816_s4 = inlined_call_operand.vmem [shape: f32[1,128], index: 4, kind: input, shape index: {}]   ;;  %s817_s5 = inlined_call_operand.hbm [shape: f32[2,128], index: 5, kind: output, shape index: {}]  }
   0x1   :  { %11 = vsyncpa [#allocation7], 0  ;;  %s31_s20 = sshll.u32 %s813_s1, 4  ;;  %s32_s20 = int_to_ptr.hbm [resolvable:$true] %s31_s20 }
   0x2   :  { %12 = vsyncpa [#allocation5], 0  ;;  %s699_s21 = smov [#allocation6]   ;;  %s17_s25 = sshll.u32 %s812_s0, 4  ;;  %s18_s25 = int_to_ptr.hbm [resolvable:$true] %s17_s25 }
   0x3   :  { %s33_s22 = sshll.u32 %s699_s21, 4  ;;  %s700_s26 = smov [#allocation3]   ;;  %s34_s22 = int_to_ptr.vmem [resolvable:$true] %s33_s22 }
   0x4   :  { %36 = dma.hbm_to_vmem [thread:$0]  %s32_s20, 64, %s34_s22, [#allocation7]  }
   0x5   :  { %s19_s27 = sshll.u32 %s700_s26, 4  ;;  %s701_s28 = smov 64   ;;  %s20_s27 = int_to_ptr.vmem [resolvable:$true] %s19_s27 }
   0x6   :  { %s702_s29 = smov 4   ;;  %s41_s1 = sshll.u32 %s814_s2, 4  ;;  %s42_s1 = int_to_ptr.hbm [resolvable:$true] %s41_s1 }
   0x7   :  { %25 = dma.hbm_to_vmem [thread:$0]  %s18_s25, 128, %s20_s27, [#allocation4], %s701_s28, %s701_s28, %s702_s29  }
   0x8   :  { %s703_s7 = smov [#allocation8]   ;;  %s704_s9 = smov 128  }
   0x9   :  { %s43_s8 = sshll.u32 %s703_s7, 4  ;;  %s705_s10 = smov 8   ;;  %s44_s8 = int_to_ptr.vmem [resolvable:$true] %s43_s8 }
   0xa   :  { %49 = dma.hbm_to_vmem [thread:$0]  %s42_s1, 1024, %s44_s8, [#allocation7], %s704_s9, %s704_s9, %s705_s10  }
   0xb   :  { %693 = dma.done.wait [#allocation4], 128  }
   0xc   :  { %694 = vsyncadd [#allocation4], 4294967168 }
   0xd   :  { %695 = dma.done.wait [#allocation7], 1088  }
   0xe   :  { %696 = vsyncadd [#allocation7], 4294966208  ;;  %v582_v0 = vld [vmem:[#allocation3] sm:$0xff]   ;;  %vm90_vm0 = vcmask 1043456   ;;  %vm70_vm1 = vcmask 25600   ;;  %v706_v13 = vmov 0.0   ;;  %v103_v22 = vlaneseq }
   0xf   :  { %v583_v1 = vunpack.c.l.bf16 %v582_v0  ;;  %v584_v2 = vunpack.c.h.bf16 %v582_v0  ;;  %71 = vst.msk [vmem:[#allocation2] sm:$0x3] %vm70_vm1, %v706_v13  ;;  %v118_v14 = vld [vmem:[#allocation6] sm:$0xf]  ;;  %vm107_vm2 = vcmask 1041409   ;;  %vm119_vm3 = vcmask 31744  }
  0x10   :  { %v124_v15 = vsel %vm90_vm0, %v118_v14, 0  ;;  %v104_v23 = vand.u32 127, %v103_v22  ;;  %v279_v38 = vld [vmem:[#allocation8 + $0x38] sm:$0xff]  ;;  %v278_v40 = vld [vmem:[#allocation8 + $0x30] sm:$0xff]  ;;  %v277_v43 = vld [vmem:[#allocation8 + $0x28] sm:$0xff]  ;;  %vm280_vm4 = vcmask 523264  }
  0x11   :  { %79 = vst [vmem:[#allocation1] ss:$2 sm:$0xff] %v583_v1  ;;  %v141_v16 = vand.u32 4294901760, %v124_v15  ;;  %v754_v39 = vand.u32 4294901760, %v279_v38  ;;  %v759_v42 = vand.u32 4294901760, %v278_v40  ;;  %v767_v46 = vand.u32 4294901760, %v277_v43 }
  0x12   :  { %83 = vst [vmem:[#allocation1 + $0x10] ss:$2 sm:$0xff] %v584_v2  ;;  %v276_v50 = vld [vmem:[#allocation8 + $0x20] sm:$0xff]  ;;  %v275_v55 = vld [vmem:[#allocation8 + $0x18] sm:$0xff]  ;;  %v274_v60 = vld [vmem:[#allocation8 + $0x10] sm:$0xff]  ;;  %vm521_vm5 = vcmask 1041408  }
  0x13   :  { %v168_v17 = vsub.f32 %v124_v15, %v141_v16  ;;  %218 = vmatpush.msra.mxu3 %v141_v16  ;;  %142 = vmatpush.msra.mxu0 %v141_v16  ;;  %v757_v41 = vsub.f32 %v279_v38, %v754_v39  ;;  %v765_v45 = vsub.f32 %v278_v40, %v759_v42  ;;  %v781_v51 = vand.u32 4294901760, %v276_v50  ;;  %v273_v1 = vld [vmem:[#allocation8 + $0x8] sm:$0xff]  ;;  %s707_s13 = smov [#allocation9]   ;;  %s570_s17 = sshll.u32 %s817_s5, 4  ;;  %s571_s17 = int_to_ptr.hbm [resolvable:$true] %s570_s17 }
  0x14   :  { %v777_v49 = vsub.f32 %v277_v43, %v767_v46  ;;  %v788_v57 = vand.u32 4294901760, %v275_v55  ;;  %v302_v63 = vand.u32 4294901760, %v274_v60  ;;  %s568_s14 = sshll.u32 %s707_s13, 4  ;;  %s569_s14 = int_to_ptr.vmem [resolvable:$true] %s568_s14 }
  0x15   :  { %v169_v18 = vand.u32 4294901760, %v168_v17  ;;  %195 = vmatpush.msra.mxu2 %v168_v17  ;;  %v327_v44 = vand.u32 4294901760, %v757_v41  ;;  %v333_v48 = vand.u32 4294901760, %v765_v45  ;;  %v344_v56 = vsub.f32 %v276_v50, %v781_v51 }
  0x16   :  { %v72_v26 = vld [vmem:[#allocation2] sm:$0x3]  ;;  %v339_v54 = vand.u32 4294901760, %v777_v49  ;;  %v350_v62 = vsub.f32 %v275_v55, %v788_v57 }
  0x17   :  { %v170_v19 = vsub.f32 %v168_v17, %v169_v18  ;;  %244 = vmatpush.msrb.mxu0 %v169_v18  ;;  %293 = vmatpush.msrb.mxu2 %v754_v39  ;;  %v328_v47 = vsub.f32 %v757_v41, %v327_v44  ;;  %v334_v53 = vsub.f32 %v765_v45, %v333_v48  ;;  %v345_v61 = vand.u32 4294901760, %v344_v56 }
  0x18   :  { %v80_v3 = vld.sshfl [vmem:[#allocation1] sm:$0xff pattern:$0x75316420]  ;;  %v81_v4 = vld.sshfl [vmem:[#allocation1 + $0x8] sm:$0xff pattern:$0x75316420]  ;;  %v340_v59 = vsub.f32 %v777_v49, %v339_v54 }
  0x19   :  { %v91_v5 = vsel %vm90_vm0, %v80_v3, 0.0  ;;  %v92_v6 = vsel %vm90_vm0, %v81_v4, 0.0  ;;  %v84_v8 = vld.sshfl [vmem:[#allocation1 + $0x10] sm:$0xff pattern:$0x75316420]  ;;  %v171_v20 = vand.u32 4294901760, %v170_v19  ;;  %295 = vmatpush.msrb.mxu2 %v759_v42  ;;  %v346_v2 = vsub.f32 %v344_v56, %v345_v61 }
  0x1a   :  { %v93_v7 = vadd.f32 %v92_v6, %v91_v5  ;;  %v85_v9 = vld.sshfl [vmem:[#allocation1 + $0x18] sm:$0xff pattern:$0x75316420]  ;;  %v96_v10 = vsel %vm90_vm0, %v84_v8, 0.0  ;;  %v329_v52 = vand.u32 4294901760, %v328_v47  ;;  %v335_v58 = vand.u32 4294901760, %v334_v53 }
  0x1b   :  { %v97_v11 = vsel %vm90_vm0, %v85_v9, 0.0  ;;  %172 = vmatpush.msra.mxu1 %v171_v20  ;;  %297 = vmatpush.msrb.mxu2 %v767_v46  ;;  %v341_v0 = vand.u32 4294901760, %v340_v59  ;;  %v351_v3 = vand.u32 4294901760, %v350_v62  ;;  %v356_v4 = vsub.f32 %v274_v60, %v302_v63  ;;  %v272_v6 = vld [vmem:[#allocation8] sm:$0xff] }
  0x1c   :  { %94 = vadd.xlane.f32.xlu0 %v93_v7  ;;  %v98_v12 = vadd.f32 %v97_v11, %v96_v10  ;;  %330 = vmatpush.msrb.mxu3 %v329_v52  ;;  %v304_v5 = vand.u32 4294901760, %v273_v1  ;;  %v347_v7 = vand.u32 4294901760, %v346_v2  ;;  %v306_v11 = vand.u32 4294901760, %v272_v6 }
  0x1d   :  { %266 = vmatpush.msrb.mxu1 %v141_v16  ;;  %299 = vmatpush.msrb.mxu2 %v781_v51  ;;  %v352_v8 = vsub.f32 %v350_v62, %v351_v3  ;;  %v357_v9 = vand.u32 4294901760, %v356_v4 }
  0x1e   :  { %336 = vmatpush.msrb.mxu3 %v335_v58  ;;  %v362_v10 = vsub.f32 %v273_v1, %v304_v5  ;;  %v368_v15 = vsub.f32 %v272_v6, %v306_v11 }
  0x1f   :  { %301 = vmatpush.msrb.mxu2 %v788_v57  ;;  %v358_v13 = vsub.f32 %v356_v4, %v357_v9 }
  0x20   :  { %342 = vmatpush.msrb.mxu3 %v341_v0  ;;  %v363_v14 = vand.u32 4294901760, %v362_v10  ;;  %v369_v18 = vand.u32 4294901760, %v368_v15 }
  0x21   :  { %303 = vmatpush.msrb.mxu2 %v302_v63  ;;  %v359_v16 = vand.u32 4294901760, %v358_v13 }
  0x22   :  { %348 = vmatpush.msrb.mxu3 %v347_v7  ;;  %v364_v17 = vsub.f32 %v362_v10, %v363_v14  ;;  %v370_v20 = vsub.f32 %v368_v15, %v369_v18 }
  0x23   :  { %305 = vmatpush.msrb.mxu2 %v304_v5 }
  0x24   :  { %99 = vadd.xlane.f32.xlu0 %v98_v12  ;;  %v353_v12 = vand.u32 4294901760, %v352_v8  ;;  %v365_v19 = vand.u32 4294901760, %v364_v17 }
  0x25   :  { %307 = vmatpush.msrb.mxu2 %v306_v11 }
  0x26   :  { %354 = vmatpush.msrb.mxu3 %v353_v12 }
  0x28   :  { %360 = vmatpush.msrb.mxu3 %v359_v16 }
  0x2a   :  { %366 = vmatpush.msrb.mxu3 %v365_v19 }
  0x8f   :  { %v95_v21 = vpop.xlane.xlu0 %94 }
  0x90   :  { %v105_v25 = vperm.slane %v95_v21, %v104_v23  ;;  %v371_v21 = vand.u32 4294901760, %v370_v20 }
  0x92   :  { %372 = vmatpush.msrb.mxu3 %v371_v21 }
  0x97   :  { %v100_v24 = vpop.xlane.xlu0 %99 }
  0x98   :  { %v106_v27 = vperm.slane %v100_v24, %v104_v23 }
  0x9a   :  { %v108_v28 = vsel %vm107_vm2, %v106_v27, %v105_v25 }
  0x9b   :  { %v110_v29 = vadd.f32 %v108_v28, %v72_v26 }
  0x9d   :  { %112 = vst.msk [vmem:[#allocation2] sm:$0x3] %vm70_vm1, %v110_v29 }
  0xa4   :  { %v116_v30 = vld [vmem:[#allocation2] sm:$0x3] }
  0xa5   :  { %v117_v31 = vmul.f32 0.00390625, %v116_v30 }
  0xa7   :  { %v121_v32 = vsel %vm119_vm3, %v117_v31, 0 }
  0xa8   :  { %v143_v33 = vand.u32 4294901760, %v121_v32 }
  0xaa   :  { %174 = vmatmul.f32.vlgmr.msra.gmra.mxu1 %v143_v33  ;;  %v144_v34 = vsub.f32 %v121_v32, %v143_v33 }
  0xab   :  { %425 = vmatpush.msra.mxu1 %v754_v39 }
  0xac   :  { %198 = vmatmul.f32.vlgmr.msra.gmra.mxu2 %v144_v34  ;;  %v145_v35 = vand.u32 4294901760, %v144_v34 }
  0xad   :  { %427 = vmatpush.msra.mxu1 %v759_v42  ;;  %458 = vmatpush.msra.mxu2 %v327_v44 }
  0xae   :  { %222 = vmatmul.f32.vlgmr.msra.gmra.mxu3 %v145_v35  ;;  %v146_v36 = vsub.f32 %v144_v34, %v145_v35 }
  0xaf   :  { %429 = vmatpush.msra.mxu1 %v767_v46  ;;  %462 = vmatpush.msra.mxu2 %v333_v48 }
  0xb0   :  { %v147_v37 = vand.u32 4294901760, %v146_v36  ;;  %501 = vmatpush.msra.mxu3 %v754_v39 }
  0xb1   :  { %431 = vmatpush.msra.mxu1 %v781_v51  ;;  %466 = vmatpush.msra.mxu2 %v339_v54 }
  0xb2   :  { %148 = vmatmul.f32.vlgmr.msra.gmra.mxu0 %v147_v37  ;;  %268 = vmatmul.f32.vlgmr.msrb.gmra.mxu1 %v143_v33 }
  0xb3   :  { %388 = vmatpush.msra.mxu0 %v757_v41  ;;  %433 = vmatpush.msra.mxu1 %v788_v57 }
  0xb4   :  { %470 = vmatpush.msra.mxu2 %v345_v61  ;;  %503 = vmatpush.msra.mxu3 %v759_v42 }
  0xb5   :  { %391 = vmatpush.msra.mxu0 %v765_v45  ;;  %435 = vmatpush.msra.mxu1 %v302_v63 }
  0xb6   :  { %474 = vmatpush.msra.mxu2 %v351_v3  ;;  %505 = vmatpush.msra.mxu3 %v767_v46 }
  0xb7   :  { %394 = vmatpush.msra.mxu0 %v777_v49  ;;  %437 = vmatpush.msra.mxu1 %v304_v5 }
  0xb8   :  { %478 = vmatpush.msra.mxu2 %v357_v9  ;;  %507 = vmatpush.msra.mxu3 %v781_v51 }
  0xb9   :  { %397 = vmatpush.msra.mxu0 %v344_v56  ;;  %439 = vmatpush.msra.mxu1 %v306_v11 }
  0xba   :  { %246 = vmatmul.f32.vlgmr.msrb.gmra.mxu0 %v143_v33  ;;  %482 = vmatpush.msra.mxu2 %v363_v14 }
  0xbb   :  { %400 = vmatpush.msra.mxu0 %v350_v62  ;;  %509 = vmatpush.msra.mxu3 %v788_v57 }
  0xbc   :  { %486 = vmatpush.msra.mxu2 %v369_v18 }
  0xbd   :  { %403 = vmatpush.msra.mxu0 %v356_v4  ;;  %511 = vmatpush.msra.mxu3 %v302_v63 }
  0xbf   :  { %406 = vmatpush.msra.mxu0 %v362_v10  ;;  %513 = vmatpush.msra.mxu3 %v304_v5  ;;  %v540_v10 = vld [vmem:[%s815_s3] sm:$0x1] }
  0xc1   :  { %409 = vmatpush.msra.mxu0 %v368_v15  ;;  %515 = vmatpush.msra.mxu3 %v306_v11  ;;  %v594_v15 = vld [vmem:[%s816_s4] ss:$0 sm:$0xff] }
 0x127   :  { %v175_v22 = vpop.f32.mrf.mxu1 }
 0x12f   :  { %v149_v23 = vpop.f32.mrf.mxu0  ;;  %v199_v25 = vpop.f32.mrf.mxu2 }
 0x130   :  { %v176_v24 = vadd.f32 %v175_v22, %v149_v23  ;;  %v269_v31 = vpop.f32.mrf.mxu1 }
 0x131   :  { %v223_v27 = vpop.f32.mrf.mxu3 }
 0x132   :  { %v200_v26 = vadd.f32 %v199_v25, %v176_v24 }
 0x134   :  { %v224_v28 = vadd.f32 %v223_v27, %v200_v26 }
 0x137   :  { %v247_v29 = vpop.f32.mrf.mxu0 }
 0x138   :  { %v248_v30 = vadd.f32 %v247_v29, %v224_v28 }
 0x13a   :  { %v270_v32 = vadd.f32 %v269_v31, %v248_v30 }
 0x13c   :  { %v282_v33 = vsel %vm280_vm4, %v270_v32, 0 }
 0x13d   :  { %v308_v34 = vand.u32 4294901760, %v282_v33 }
 0x13f   :  { %v309_v35 = vsub.f32 %v282_v33, %v308_v34  ;;  %374 = vmatmul.f32.vlgmr.msrb.gmra.mxu3 %v308_v34 }
 0x141   :  { %412 = vmatmul.f32.vlgmr.msra.gmra.mxu0 %v309_v35  ;;  %v310_v36 = vand.u32 4294901760, %v309_v35 }
 0x143   :  { %443 = vmatmul.f32.vlgmr.msra.gmra.mxu1 %v310_v36  ;;  %v311_v37 = vsub.f32 %v309_v35, %v310_v36 }
 0x145   :  { %v312_v38 = vand.u32 4294901760, %v311_v37 }
 0x147   :  { %313 = vmatmul.f32.vlgmr.msrb.gmra.mxu2 %v312_v38  ;;  %517 = vmatmul.f32.vlgmr.msra.gmra.mxu3 %v308_v34 }
 0x14f   :  { %488 = vmatmul.f32.vlgmr.msra.gmra.mxu2 %v308_v34 }
 0x1be   :  { %v413_v42 = vpop.f32.mrf.mxu0 }
 0x1c0   :  { %v444_v44 = vpop.f32.mrf.mxu1 }
 0x1c2   :  { %v375_v39 = vpop.f32.mrf.mxu3 }
 0x1ca   :  { %v314_v40 = vpop.f32.mrf.mxu2  ;;  %v518_v48 = vpop.f32.mrf.mxu3 }
 0x1cb   :  { %v376_v41 = vadd.f32 %v375_v39, %v314_v40 }
 0x1cd   :  { %v414_v43 = vadd.f32 %v413_v42, %v376_v41 }
 0x1cf   :  { %v445_v45 = vadd.f32 %v444_v44, %v414_v43 }
 0x1d2   :  { %v489_v46 = vpop.f32.mrf.mxu2 }
 0x1d3   :  { %v490_v47 = vadd.f32 %v489_v46, %v445_v45 }
 0x1d5   :  { %v519_v49 = vadd.f32 %v518_v48, %v490_v47 }
 0x1d7   :  { %v522_v50 = vsel %vm521_vm5, %v519_v49, 0.0 }
 0x1d8   :  { %v523_v51 = vrot.slane %v522_v50, 4 }
 0x1da   :  { %v524_v52 = vadd.f32 %v523_v51, %v522_v50 }
 0x1dc   :  { %v525_v53 = vrot.slane %v524_v52, 2 }
 0x1de   :  { %v526_v54 = vadd.f32 %v525_v53, %v524_v52 }
 0x1e0   :  { %v527_v55 = vrot.slane %v526_v54, 1 }
 0x1e2   :  { %v528_v56 = vadd.f32 %v527_v55, %v526_v54 }
 0x1e4   :  { %v529_v57 = vmul.f32 0.5, %v528_v56 }
 0x1e6   :  { %v530_v58 = vsub.f32 %v519_v49, %v529_v57 }
 0x1e8   :  { %v531_v59 = vmul.f32 %v530_v58, %v530_v58 }
 0x1ea   :  { %v532_v60 = vsel %vm521_vm5, %v531_v59, 0.0 }
 0x1eb   :  { %v533_v61 = vrot.slane %v532_v60, 4 }
 0x1ed   :  { %v534_v62 = vadd.f32 %v533_v61, %v532_v60 }
 0x1ef   :  { %v535_v63 = vrot.slane %v534_v62, 2 }
 0x1f1   :  { %v536_v0 = vadd.f32 %v535_v63, %v534_v62 }
 0x1f3   :  { %v537_v1 = vrot.slane %v536_v0, 1 }
 0x1f5   :  { %v538_v2 = vadd.f32 %v537_v1, %v536_v0 }
 0x1f7   :  { %v539_v3 = vmul.f32 0.5, %v538_v2 }
 0x1f9   :  { %v541_v4 = vadd.f32 1e-05, %v539_v3 }
 0x1fb   :  { %595 = vrsqrt.f32 %v541_v4  ;;  %vm548_vm7 = vweird.f32 %v541_v4 }
 0x201   :  { %v596_v5 = vpop.eup %595 }
 0x202   :  { %v543_v6 = vmul.f32 %v596_v5, %v541_v4  ;;  %vm549_vm6 = vweird.f32 %v596_v5 }
 0x203   :  { %vm550_vm8 = vmor %vm548_vm7, %vm549_vm6 }
 0x204   :  { %v544_v7 = vmul.f32 %v596_v5, %v543_v6 }
 0x206   :  { %v545_v8 = vmul.f32 0.5, %v544_v7 }
 0x208   :  { %v546_v9 = vsub.f32 1.5, %v545_v8 }
 0x20a   :  { %v547_v11 = vmul.f32 %v596_v5, %v546_v9 }
 0x20c   :  { %v551_v12 = vsel %vm550_vm8, %v596_v5, %v547_v11 }
 0x20d   :  { %v552_v13 = vmul.f32 %v551_v12, %v540_v10 }
 0x20f   :  { %v554_v14 = vperm.slane %v552_v13, 0 }
 0x211   :  { %v556_v16 = vmul.f32 %v554_v14, %v530_v58 }
 0x213   :  { %v561_v17 = vadd.f32 %v594_v15, %v556_v16 }
 0x215   :  { %562 = vst [vmem:[#allocation9] sm:$0x3] %v561_v17 }
 0x216   :  { %573 = dma.vmem_to_hbm [thread:$0]  %s569_s14, 32, %s571_s17, [#allocation5]  }
 0x217   :  { %697 = dma.done.wait [#allocation5], 32  }
 0x218   :  { %698 = vsyncadd [#allocation5], 4294967264 }
 0x219   :  { %578 = vsyncpa [#allocation4], 1 }
 0x21a   :  { %579 = vsyncpa [#allocation7], 1 }
 0x21b   :  { %580 = vsyncpa [#allocation5], 1 }

</bundles_post_ra>
